<compile_context>
chip_gen: v7x
topology: tpu7x:2x2x1
jax: 0.10.0
libtpu: 0.0.40
codegen_flags: <defaults>
</compile_context>

<pallas_src>
import functools

import jax
import jax.numpy as jnp
import numpy as np
from jax.experimental import pallas as pl
from jax.experimental.pallas import tpu as pltpu


def _round_up(x, m):
    return ((x + m - 1) // m) * m


def _individual_conv2d_kernel(x_ref, w_ref, b_ref, o_ref, *, kh, h_out, stride):
    """Banded-matmul conv.

    x_ref: (Nb, Hp, Kp)   lane-dense padded input block (bf16), Kp = roundup(Wp*Cin, 128)
    w_ref: (KH, Kp, Np)   banded weight matrices (bf16),        Np = roundup(Wout*Cout, 128)
    b_ref: (1, Np)        bias tiled along Wout, zero-padded (f32)
    o_ref: (Nb, Hout, Np) lane-dense output block (f32)
    """
    nb, _, kp = x_ref.shape
    np_out = o_ref.shape[-1]

    acc = jnp.zeros((nb * h_out, np_out), jnp.float32)
    # Unrolled loop over the KH kernel rows: one big MXU matmul per row.
    for i in range(kh):
        if stride == 1:
            rows = x_ref[:, i:i + h_out, :]                       # (Nb, Hout, Kp)
        else:
            # TODO(synk): stride>1 uses a strided sublane read (pl.ds stride);
            # only the stride==1 path is exercised by the test below.
            rows = x_ref[:, pl.ds(i, h_out, stride), :]
        lhs = rows.reshape(nb * h_out, kp)                        # leading-dim merge only
        acc = acc + jnp.dot(lhs, w_ref[i],
                            preferred_element_type=jnp.float32)
    acc = acc + b_ref[...].astype(jnp.float32)                    # (1, Np) broadcast
    o_ref[...] = acc.reshape(o_ref.shape).astype(o_ref.dtype)


def _toeplitz_weights(w_hwio, w_out, stride, k_pad, n_pad, dtype):
    """Banded weights: W_mat[i, (j + w*stride)*Cin + c, w*Cout + co] = W[i, j, c, co]."""
    KH, KW, Cin, Cout = w_hwio.shape
    j_idx = jnp.arange(KW)
    w_idx = jnp.arange(w_out)
    c_idx = jnp.arange(Cin)
    o_idx = jnp.arange(Cout)
    rows = ((j_idx[:, None, None, None] + stride * w_idx[None, :, None, None]) * Cin
            + c_idx[None, None, :, None])                         # (KW, Wout, Cin, 1)
    cols = w_idx[None, :, None, None] * Cout + o_idx[None, None, None, :]  # (1, Wout, 1, Cout)
    shape = (KW, w_out, Cin, Cout)
    rows = jnp.broadcast_to(rows, shape).reshape(-1)
    cols = jnp.broadcast_to(cols, shape).reshape(-1)
    vals = jnp.broadcast_to(w_hwio[:, :, None, :, :],
                            (KH,) + shape).reshape(KH, -1).astype(dtype)
    w_mat = jnp.zeros((KH, k_pad, n_pad), dtype)                  # padded rows/cols stay zero
    return w_mat.at[:, rows, cols].set(vals)


def individual_conv2d(x, w_hwio, bias, *, padding, stride,
                      images_per_block=8, compute_dtype=jnp.bfloat16):
    """x: (B, T, C_in, H, W); w_hwio: (KH, KW, C_in, C_out); bias: (C_out,)."""
    B, T, C, H, W = x.shape
    KH, KW, Cin, Cout = w_hwio.shape
    assert Cin == C

    N = B * T
    Hp, Wp = H + 2 * padding, W + 2 * padding
    Hout = (Hp - KH) // stride + 1
    Wout = (Wp - KW) // stride + 1

    k_real = Wp * C                      # contraction lanes actually used
    n_real = Wout * Cout                 # output lanes actually used
    k_pad = _round_up(k_real, 128)       # lane-align the MXU K dim
    n_pad = _round_up(n_real, 128)       # lane-align the output / MXU N dim

    # ---- layout glue (plain JAX): NCHW -> lane-dense (N, Hp, Kp), bf16 ----
    x_nhwc = x.reshape(N, C, H, W).transpose(0, 2, 3, 1)
    x_sp = jnp.pad(x_nhwc, ((0, 0), (padding, padding), (padding, padding), (0, 0)))
    x_flat = x_sp.reshape(N, Hp, k_real).astype(compute_dtype)
    if k_pad != k_real:
        x_flat = jnp.pad(x_flat, ((0, 0), (0, 0), (0, k_pad - k_real)))

    # Block the image axis; pad N up to a multiple of the block size.
    nb = min(images_per_block, N)
    n_blocks = -(-N // nb)
    n_img_pad = n_blocks * nb
    if n_img_pad != N:
        x_flat = jnp.pad(x_flat, ((0, n_img_pad - N), (0, 0), (0, 0)))

    # ---- banded weights & lane-tiled bias (both lane-padded) ----
    w_mat = _toeplitz_weights(w_hwio, Wout, stride, k_pad, n_pad, compute_dtype)
    bias_tile = jnp.tile(bias.astype(jnp.float32), Wout)
    bias_tile = jnp.pad(bias_tile, (0, n_pad - n_real)).reshape(1, n_pad)

    kernel = functools.partial(_individual_conv2d_kernel,
                               kh=KH, h_out=Hout, stride=stride)

    out_flat = pl.pallas_call(
        kernel,
        out_shape=jax.ShapeDtypeStruct((n_img_pad, Hout, n_pad), x.dtype),
        grid_spec=pltpu.PrefetchScalarGridSpec(
            num_scalar_prefetch=0,
            grid=(n_blocks,),
            in_specs=[
                pl.BlockSpec((nb, Hp, k_pad), lambda n: (n, 0, 0)),
                pl.BlockSpec((KH, k_pad, n_pad), lambda n: (0, 0, 0)),
                pl.BlockSpec((1, n_pad), lambda n: (0, 0)),
            ],
            out_specs=pl.BlockSpec((nb, Hout, n_pad), lambda n: (n, 0, 0)),
        ),
        compiler_params=pltpu.CompilerParams(
            dimension_semantics=("parallel",),
            vmem_limit_bytes=32 * 1024 * 1024,   # safe on v5e/v6e/v7x for these blocks
        ),
    )(x_flat, w_mat, bias_tile)

    # (N, Hout, Np) -> (B, T, Cout, Hout, Wout)
    out = out_flat[:N, :, :n_real].reshape(N, Hout, Wout, Cout)
    return out.transpose(0, 3, 1, 2).reshape(B, T, Cout, Hout, Wout)


def _reference(x, w_hwio, bias, *, padding, stride):
    """Pure-JAX reference (lax conv) matching the PyTorch semantics."""
    B, T, C, H, W = x.shape
    KH, KW, Cin, Cout = w_hwio.shape
    w_oihw = w_hwio.transpose(3, 2, 0, 1)
    y = jax.lax.conv_general_dilated(
        x.reshape(B * T, C, H, W), w_oihw,
        window_strides=(stride, stride),
        padding=((padding, padding), (padding, padding)),
        dimension_numbers=("NCHW", "OIHW", "NCHW"))
    y = y + bias[None, :, None, None]
    Hout, Wout = y.shape[-2:]
    return y.reshape(B, T, Cout, Hout, Wout)


if __name__ == "__main__":
    # Module hyperparameters (synthetic, deterministic init).
    B, T = 2, 3            # T == "depth" in the PyTorch module
    C_in, C_out = 4, 8
    H = W = 16
    KERNEL, PADDING, STRIDE = 3, 1, 1

    key = jax.random.PRNGKey(0)
    kx, kw, kb = jax.random.split(key, 3)

    x = jax.random.normal(kx, (B, T, C_in, H, W), dtype=jnp.float32)
    fan_in = C_in * KERNEL * KERNEL
    bound = 1.0 / np.sqrt(fan_in)
    w_hwio = jax.random.uniform(kw, (KERNEL, KERNEL, C_in, C_out),
                                minval=-bound, maxval=bound, dtype=jnp.float32)
    bias = jax.random.uniform(kb, (C_out,), minval=-bound, maxval=bound,
                              dtype=jnp.float32)

    out = individual_conv2d(x, w_hwio, bias, padding=PADDING, stride=STRIDE)
    out = jax.block_until_ready(out)

    ref = _reference(x, w_hwio, bias, padding=PADDING, stride=STRIDE)
    np.testing.assert_allclose(np.asarray(out), np.asarray(ref),
                               rtol=2e-2, atol=2e-2)
    # Only holds for 'same'-style configs (stride=1, pad=(k-1)//2); test-only.
    assert out.shape == (B, T, C_out, H, W)

    print("KERNEL_OK")
</pallas_src>

<mosaic_0001>
module attributes {stable_mosaic.version = 11 : i64} {
  func.func @_individual_conv2d_kernel(%arg0: i32, %arg1: memref<6x18x128xbf16, #tpu.memory_space<vmem>>, %arg2: memref<3x128x128xbf16, #tpu.memory_space<vmem>>, %arg3: memref<1x128xf32, #tpu.memory_space<vmem>>, %arg4: memref<6x16x128xf32, #tpu.memory_space<vmem>>) attributes {dimension_semantics = [#tpu.dimension_semantics<parallel>], iteration_bounds = array<i64: 1>, scalar_prefetch = 0 : i64, scratch_operands = 0 : i64, tpu.core_type = #tpu.core_type<tc>, window_params = [{transform_indices = @transform_0, window_bounds = array<i64: 6, 18, 128>}, {pipeline_mode = #tpu.pipeline_mode<synchronous>, transform_indices = @transform_1, window_bounds = array<i64: 3, 128, 128>}, {pipeline_mode = #tpu.pipeline_mode<synchronous>, transform_indices = @transform_2, window_bounds = array<i64: 1, 128>}, {transform_indices = @transform_3, window_bounds = array<i64: 6, 16, 128>}]} {
    %cst = arith.constant 0.000000e+00 : f32
    %0 = vector.broadcast %cst : f32 to vector<96x128xf32>
    %c0 = arith.constant 0 : index
    %c0_0 = arith.constant 0 : index
    %c0_1 = arith.constant 0 : index
    %1 = vector.load %arg1[%c0, %c0_0, %c0_1] : memref<6x18x128xbf16, #tpu.memory_space<vmem>>, vector<6x16x128xbf16>
    %2 = vector.shape_cast %1 : vector<6x16x128xbf16> to vector<96x128xbf16>
    %c0_2 = arith.constant 0 : index
    %c0_3 = arith.constant 0 : index
    %c0_4 = arith.constant 0 : index
    %3 = vector.load %arg2[%c0_2, %c0_3, %c0_4] : memref<3x128x128xbf16, #tpu.memory_space<vmem>>, vector<1x128x128xbf16>
    %4 = vector.shape_cast %3 : vector<1x128x128xbf16> to vector<128x128xbf16>
    %cst_5 = arith.constant dense<0.000000e+00> : vector<96x128xf32>
    %5 = tpu.matmul %2, %4, %cst_5 {dimension_numbers = #tpu.dot_dimension_numbers<[1], [0], [0], [1], [0, 0, 1, 1], [], []>} : vector<96x128xbf16>, vector<128x128xbf16>, vector<96x128xf32> -> vector<96x128xf32>
    %6 = arith.addf %0, %5 : vector<96x128xf32>
    %c0_6 = arith.constant 0 : index
    %c1 = arith.constant 1 : index
    %c0_7 = arith.constant 0 : index
    %7 = vector.load %arg1[%c0_6, %c1, %c0_7] : memref<6x18x128xbf16, #tpu.memory_space<vmem>>, vector<6x16x128xbf16>
    %8 = vector.shape_cast %7 : vector<6x16x128xbf16> to vector<96x128xbf16>
    %c1_8 = arith.constant 1 : index
    %c0_9 = arith.constant 0 : index
    %c0_10 = arith.constant 0 : index
    %9 = vector.load %arg2[%c1_8, %c0_9, %c0_10] : memref<3x128x128xbf16, #tpu.memory_space<vmem>>, vector<1x128x128xbf16>
    %10 = vector.shape_cast %9 : vector<1x128x128xbf16> to vector<128x128xbf16>
    %cst_11 = arith.constant dense<0.000000e+00> : vector<96x128xf32>
    %11 = tpu.matmul %8, %10, %cst_11 {dimension_numbers = #tpu.dot_dimension_numbers<[1], [0], [0], [1], [0, 0, 1, 1], [], []>} : vector<96x128xbf16>, vector<128x128xbf16>, vector<96x128xf32> -> vector<96x128xf32>
    %12 = arith.addf %6, %11 : vector<96x128xf32>
    %c0_12 = arith.constant 0 : index
    %c2 = arith.constant 2 : index
    %c0_13 = arith.constant 0 : index
    %13 = vector.load %arg1[%c0_12, %c2, %c0_13] : memref<6x18x128xbf16, #tpu.memory_space<vmem>>, vector<6x16x128xbf16>
    %14 = vector.shape_cast %13 : vector<6x16x128xbf16> to vector<96x128xbf16>
    %c2_14 = arith.constant 2 : index
    %c0_15 = arith.constant 0 : index
    %c0_16 = arith.constant 0 : index
    %15 = vector.load %arg2[%c2_14, %c0_15, %c0_16] : memref<3x128x128xbf16, #tpu.memory_space<vmem>>, vector<1x128x128xbf16>
    %16 = vector.shape_cast %15 : vector<1x128x128xbf16> to vector<128x128xbf16>
    %cst_17 = arith.constant dense<0.000000e+00> : vector<96x128xf32>
    %17 = tpu.matmul %14, %16, %cst_17 {dimension_numbers = #tpu.dot_dimension_numbers<[1], [0], [0], [1], [0, 0, 1, 1], [], []>} : vector<96x128xbf16>, vector<128x128xbf16>, vector<96x128xf32> -> vector<96x128xf32>
    %18 = arith.addf %12, %17 : vector<96x128xf32>
    %c0_18 = arith.constant 0 : index
    %c0_19 = arith.constant 0 : index
    %19 = vector.load %arg3[%c0_18, %c0_19] : memref<1x128xf32, #tpu.memory_space<vmem>>, vector<1x128xf32>
    %20 = vector.broadcast %19 : vector<1x128xf32> to vector<96x128xf32>
    %21 = arith.addf %18, %20 : vector<96x128xf32>
    %22 = vector.shape_cast %21 : vector<96x128xf32> to vector<6x16x128xf32>
    %c0_20 = arith.constant 0 : index
    %c0_21 = arith.constant 0 : index
    %c0_22 = arith.constant 0 : index
    %23 = vector.load %arg4[%c0_20, %c0_21, %c0_22] : memref<6x16x128xf32, #tpu.memory_space<vmem>>, vector<6x16x128xf32>
    tpu.vector_store %arg4[%c0_20, %c0_21, %c0_22], %22 {strides = array<i32>} : memref<6x16x128xf32, #tpu.memory_space<vmem>>, vector<6x16x128xf32>,
    return
  }
  func.func @transform_0(%arg0: i32) -> (i32, i32, i32) {
    %c0_i32 = arith.constant 0 : i32
    %c0_i32_0 = arith.constant 0 : i32
    %c0_i32_1 = arith.constant 0 : i32
    return %arg0, %c0_i32, %c0_i32_0 : i32, i32, i32
  }
  func.func @transform_1(%arg0: i32) -> (i32, i32, i32) {
    %c0_i32 = arith.constant 0 : i32
    %c0_i32_0 = arith.constant 0 : i32
    %c0_i32_1 = arith.constant 0 : i32
    %c0_i32_2 = arith.constant 0 : i32
    return %c0_i32, %c0_i32_0, %c0_i32_1 : i32, i32, i32
  }
  func.func @transform_2(%arg0: i32) -> (i32, i32) {
    %c0_i32 = arith.constant 0 : i32
    %c0_i32_0 = arith.constant 0 : i32
    %c0_i32_1 = arith.constant 0 : i32
    return %c0_i32, %c0_i32_0 : i32, i32
  }
  func.func @transform_3(%arg0: i32) -> (i32, i32, i32) {
    %c0_i32 = arith.constant 0 : i32
    %c0_i32_0 = arith.constant 0 : i32
    %c0_i32_1 = arith.constant 0 : i32
    return %arg0, %c0_i32, %c0_i32_0 : i32, i32, i32
  }
}

</mosaic_0001>

<bundles_post_ra>
// kernel: tpu_custom_call.1
= control target key start
LH: loop header
LB: loop body
LE: loop exit
PB: predicated region body
PF: predicated region fallthrough
CT: control target
= control target key end

     0   :  { %8 = vsyncpa [#allocation3], 0  ;;  %s1393_s0 = inlined_call_operand.hbm [shape: bf16[6,18,128], index: 0, kind: input, shape index: {}]   ;;  %s1394_s1 = inlined_call_operand.hbm [shape: bf16[3,128,128], index: 1, kind: input, shape index: {}]   ;;  %s1395_s2 = inlined_call_operand.vmem [shape: f32[1,128], index: 2, kind: input, shape index: {}]   ;;  %s1396_s3 = inlined_call_operand.hbm [shape: f32[6,16,128], index: 3, kind: output, shape index: {}]  }
   0x1   :  { %9 = vsyncpa [#allocation6], 0 }
   0x2   :  { %10 = vsyncpa [#allocation4], 0  ;;  %s1178_s12 = smov [#allocation2]   ;;  %s1106_s16 = scalar_lea.hbm %s1393_s0, 1152 }
   0x3   :  { %s16_s13 = sshll.u32 %s1178_s12, 4  ;;  %p1107_p0 = scmp.ne.s32.totalorder %s1393_s0, %s1106_s16  ;;  %s17_s13 = int_to_ptr.vmem [resolvable:$true] %s16_s13 }
   0x4   :  { %p1110_p1 = scmp.lt.u32.totalorder %s1106_s16, %s1393_s0 }
   0x6   :  { %p1112_p2 = pnand %p1110_p1, %p1107_p0 }
   0x8   :  { %1115 = shalt.err (!%p1112_p2)
}
   0x9   :  { %s1116_s21 = scalar_lea.vmem %s17_s13, 1152  ;;  %p1121_p4 = scmp.lt.s32.totalorder %s17_s13, %s17_s13 }
   0xa   :  { %p1117_p3 = scmp.ne.s32.totalorder %s17_s13, %s1116_s21  ;;  %p1122_p5 = scmp.lt.s32.totalorder %s1116_s21, %s1116_s21 }
   0xc   :  { %p1123_p6 = por %p1122_p5, %p1121_p4 }
   0xe   :  { %p1124_p7 = pnand %p1123_p6, %p1117_p3 }
  0x10   :  { %1127 = shalt.err (!%p1124_p7)
}
  0x11   :  { %s1179_s22 = smov 64   ;;  %s1180_s23 = smov 4  }
  0x12   :  { %22 = dma.hbm_to_vmem [thread:$0]  %s1393_s0, 1152, %s17_s13, [#allocation3], %s1179_s22, %s1179_s22, %s1180_s23  }
  0x13   :  { %s1181_s26 = smov [#allocation5]   ;;  %s1128_s30 = scalar_lea.hbm %s1394_s1, 3072 }
  0x14   :  { %s28_s27 = sshll.u32 %s1181_s26, 4  ;;  %p1129_p8 = scmp.ne.s32.totalorder %s1394_s1, %s1128_s30  ;;  %s29_s27 = int_to_ptr.vmem [resolvable:$true] %s28_s27 }
  0x15   :  { %p1132_p9 = scmp.lt.u32.totalorder %s1128_s30, %s1394_s1 }
  0x17   :  { %p1134_p10 = pnand %p1132_p9, %p1129_p8 }
  0x19   :  { %1137 = shalt.err (!%p1134_p10)
}
  0x1a   :  { %s1138_s8 = scalar_lea.vmem %s29_s27, 3072  ;;  %p1143_p12 = scmp.lt.s32.totalorder %s29_s27, %s29_s27 }
  0x1b   :  { %p1139_p11 = scmp.ne.s32.totalorder %s29_s27, %s1138_s8  ;;  %p1144_p13 = scmp.lt.s32.totalorder %s1138_s8, %s1138_s8 }
  0x1d   :  { %p1145_p0 = por %p1144_p13, %p1143_p12 }
  0x1f   :  { %p1146_p1 = pnand %p1145_p0, %p1139_p11 }
  0x21   :  { %1149 = shalt.err (!%p1146_p1)
}
  0x22   :  { %34 = dma.hbm_to_vmem [thread:$0]  %s1394_s1, 3072, %s29_s27, [#allocation6], %s1179_s22, %s1179_s22, %s1180_s23  }
  0x23   :  { %1172 = dma.done.wait [#allocation3], 1152  }
  0x24   :  { %1173 = vsyncadd [#allocation3], 4294966144 }
  0x25   :  { %1174 = dma.done.wait [#allocation6], 3072  }
  0x26   :  { %1175 = vsyncadd [#allocation6], 4294964224  ;;  %v1076_v0 = vld [vmem:[#allocation5 + $0x40] sm:$0xff]   ;;  %v1078_v2 = vld [vmem:[#allocation5 + $0x48] sm:$0xff]   ;;  %vm78_vm0 = vsmask.f32 3328 }
  0x27   :  { %v1077_v1 = vld [vmem:[#allocation5] sm:$0xff]   ;;  %945 = vmatprep.subr.bf16.mxu1 %v1076_v0  ;;  %v1079_v3 = vld [vmem:[#allocation5 + $0x8] sm:$0xff]   ;;  %v1080_v4 = vld [vmem:[#allocation5 + $0x50] sm:$0xff]   ;;  %vm79_vm1 = vsmask.f32 7440  ;;  %vm578_vm3 = vcmask 1042432  }
  0x28   :  { %973 = vmatprep.subr.bf16.mxu0 %v1077_v1  ;;  %946 = vmatpush3.bf16.msra.mxu1 %v1076_v0  ;;  %v1081_v5 = vld [vmem:[#allocation5 + $0x10] sm:$0xff]   ;;  %v1082_v6 = vld [vmem:[#allocation5 + $0x58] sm:$0xff]   ;;  %v1084_v8 = vld [vmem:[#allocation5 + $0x60] sm:$0xff]   ;;  %vm579_vm4 = vcmask 1046532  }
  0x29   :  { %974 = vmatpush3.bf16.msra.mxu0 %v1077_v1  ;;  %947 = vmatprep.subr.bf16.mxu1 %v1078_v2  ;;  %v1083_v7 = vld [vmem:[#allocation5 + $0x18] sm:$0xff]   ;;  %v1085_v9 = vld [vmem:[#allocation5 + $0x20] sm:$0xff]   ;;  %v1086_v10 = vld [vmem:[#allocation5 + $0x68] sm:$0xff]  }
  0x2a   :  { %975 = vmatprep.subr.bf16.mxu0 %v1079_v3  ;;  %v1087_v11 = vld [vmem:[#allocation5 + $0x28] sm:$0xff]   ;;  %v44_v12 = vld [vmem:[#allocation2] sm:$0xf]  ;;  %v1229_v13 = vld [vmem:[#allocation2 + $0x4] sm:$0xf] }
  0x2b   :  { %v1231_v14 = vld [vmem:[#allocation2 + $0x8] sm:$0x1]  ;;  %v82_v15 = vshrl.u32 %v44_v12, 16  ;;  %v85_v16 = vshll.u32 %v44_v12, 16  ;;  %v91_v17 = vshll.u32 %v1229_v13, 16  ;;  %v95_v18 = vshrl.u32 %v1229_v13, 16  ;;  %vm1250_vm2 = vmor %vm78_vm0, %vm79_vm1 }
  0x2c   :  { %948 = vmatpush3.bf16.msra.mxu1 %v1078_v2  ;;  %v1235_v19 = vld [vmem:[#allocation2 + $0xc] sm:$0xf]  ;;  %v1088_v20 = vld [vmem:[#allocation5 + $0x70] sm:$0xff]   ;;  %v101_v21 = vshll.u32 %v1231_v14, 16  ;;  %v1238_v22 = vld [vmem:[#allocation2 + $0x10] sm:$0xf]  ;;  %v868_v24 = vcombine.low %v44_v12, %v1229_v13 }
  0x2d   :  { %976 = vmatpush3.bf16.msra.mxu0 %v1079_v3  ;;  %949 = vmatprep.subr.bf16.mxu1 %v1080_v4  ;;  %v1240_v23 = vld [vmem:[#allocation2 + $0x14] sm:$0x1]  ;;  %v84_v25 = vrot.slane %v82_v15, 4  ;;  %v87_v26 = vrot.slane %v85_v16, 5  ;;  %v93_v27 = vrot.slane %v91_v17, 5  ;;  %v97_v28 = vrot.slane %v95_v18, 4  ;;  %vm1330_vm5 = vmor %vm578_vm3, %vm579_vm4 }
  0x2e   :  { %977 = vmatprep.subr.bf16.mxu0 %v1081_v5  ;;  %v103_v29 = vrot.slane %v101_v21, 5  ;;  %v106_v30 = vshrl.u32 %v1235_v19, 16  ;;  %v109_v31 = vshll.u32 %v1235_v19, 16  ;;  %v115_v32 = vshll.u32 %v1238_v22, 16  ;;  %v1089_v33 = vld [vmem:[#allocation5 + $0x30] sm:$0xff]   ;;  %989 = vmatprep.mubr.bf16.mxu0 %v868_v24  ;;  %v1090_v42 = vld [vmem:[#allocation5 + $0x78] sm:$0xff]  }
  0x2f   :  { %v88_v34 = vor.u32 %v87_v26, %v84_v25  ;;  %v98_v35 = vor.u32 %v97_v28, %v93_v27  ;;  %v119_v36 = vshrl.u32 %v1238_v22, 16  ;;  %v125_v37 = vshll.u32 %v1240_v23, 16  ;;  %v1254_v48 = vld [vmem:[#allocation2 + $0x18] sm:$0xf]  ;;  %v1091_v50 = vld [vmem:[#allocation5 + $0x38] sm:$0xff]   ;;  %v1093_v59 = vld [vmem:[#allocation5 + $0x80] sm:$0xff]  }
  0x30   :  { %950 = vmatpush3.bf16.msra.mxu1 %v1080_v4  ;;  %v108_v39 = vrot.slane %v106_v30, 4  ;;  %v111_v40 = vrot.slane %v109_v31, 5  ;;  %v117_v41 = vrot.slane %v115_v32, 5  ;;  %v583_v49 = vrot.slane %v1229_v13, 5  ;;  %v1261_v54 = vld [vmem:[#allocation2 + $0x1c] sm:$0xf] }
  0x31   :  { %978 = vmatpush3.bf16.msra.mxu0 %v1081_v5  ;;  %951 = vmatprep.subr.bf16.mxu1 %v1082_v6  ;;  %v89_v43 = vrot.slane %v88_v34, 4  ;;  %v99_v44 = vrot.slane %v98_v35, 4  ;;  %v121_v45 = vrot.slane %v119_v36, 4  ;;  %v127_v47 = vrot.slane %v125_v37, 5  ;;  %v1263_v55 = vld [vmem:[#allocation2 + $0x20] sm:$0x1] }
  0x32   :  { %979 = vmatprep.subr.bf16.mxu0 %v1083_v7  ;;  %v112_v46 = vor.u32 %v111_v40, %v108_v39  ;;  %v130_v56 = vshrl.u32 %v1254_v48, 16  ;;  %v133_v60 = vshll.u32 %v1254_v48, 16  ;;  %v139_v61 = vshll.u32 %v1261_v54, 16  ;;  %v1287_v25 = vld [vmem:[#allocation2 + $0x30] sm:$0xf] }
  0x33   :  { %v94_v51 = vsel %vm1250_vm2, %v89_v43, %v93_v27  ;;  %v104_v52 = vsel %vm1250_vm2, %v99_v44, %v103_v29  ;;  %v122_v53 = vor.u32 %v121_v45, %v117_v41  ;;  %v143_v0 = vshrl.u32 %v1261_v54, 16  ;;  %v1095_v26 = vld [vmem:[#allocation5 + $0x88] sm:$0xff]   ;;  %v1295_v36 = vld [vmem:[#allocation2 + $0x38] sm:$0x1] }
  0x34   :  { %952 = vmatpush3.bf16.msra.mxu1 %v1082_v6  ;;  %v854_v57 = vcombine.low %v94_v51, %v104_v52  ;;  %v113_v58 = vrot.slane %v112_v46, 4  ;;  %v132_v63 = vrot.slane %v130_v56, 4  ;;  %v149_v1 = vshll.u32 %v1263_v55, 16  ;;  %v1274_v6 = vld [vmem:[#allocation2 + $0x24] sm:$0xf] }
  0x35   :  { %980 = vmatpush3.bf16.msra.mxu0 %v1083_v7  ;;  %953 = vmatprep.subr.bf16.mxu1 %v1084_v8  ;;  %v123_v62 = vrot.slane %v122_v53, 4  ;;  %v869_v3 = vcombine.low %v1235_v19, %v1238_v22  ;;  %v135_v4 = vrot.slane %v133_v60, 5  ;;  %v141_v5 = vrot.slane %v139_v61, 5  ;;  %v1276_v7 = vld [vmem:[#allocation2 + $0x28] sm:$0xf] }
  0x36   :  { %981 = vmatprep.subr.bf16.mxu0 %v1085_v9  ;;  %v118_v2 = vsel %vm1250_vm2, %v113_v58, %v117_v41  ;;  %961 = vmatprep.mubr.bf16.mxu1 %v854_v57  ;;  %v154_v12 = vshrl.u32 %v1274_v6, 16  ;;  %v157_v17 = vshll.u32 %v1274_v6, 16  ;;  %v163_v18 = vshll.u32 %v1276_v7, 16  ;;  %v1291_v31 = vld [vmem:[#allocation2 + $0x34] sm:$0xf] }
  0x37   :  { %v136_v16 = vor.u32 %v135_v4, %v132_v63  ;;  %v167_v21 = vshrl.u32 %v1276_v7, 16  ;;  %v870_v28 = vcombine.low %v1254_v48, %v1261_v54  ;;  %v871_v35 = vcombine.low %v1274_v6, %v1276_v7  ;;  %v1305_v46 = vld [vmem:[#allocation2 + $0x3c] sm:$0xf]  ;;  %v1309_v56 = vld [vmem:[#allocation2 + $0x44] sm:$0x1] }
  0x38   :  { %954 = vmatpush3.bf16.msra.mxu1 %v1084_v8  ;;  %v128_v8 = vsel %vm1250_vm2, %v123_v62, %v127_v47  ;;  %v159_v29 = vrot.slane %v157_v17, 5  ;;  %v165_v30 = vrot.slane %v163_v18, 5  ;;  %v178_v40 = vshrl.u32 %v1287_v25, 16  ;;  %v1307_v47 = vld [vmem:[#allocation2 + $0x40] sm:$0xf]  ;;  %v1096_v48 = vld [vmem:[#allocation5 + $0x90] sm:$0xff]  }
  0x39   :  { %982 = vmatpush3.bf16.msra.mxu0 %v1085_v9  ;;  %955 = vmatprep.subr.bf16.mxu1 %v1086_v10  ;;  %v145_v9 = vrot.slane %v143_v0, 4  ;;  %v855_v15 = vcombine.low %v118_v2, %v128_v8  ;;  %v137_v27 = vrot.slane %v136_v16, 4  ;;  %v181_v41 = vshll.u32 %v1287_v25, 16 }
  0x3a   :  { %983 = vmatprep.subr.bf16.mxu0 %v1087_v11  ;;  %v187_v44 = vshll.u32 %v1291_v31, 16  ;;  %v191_v45 = vshrl.u32 %v1291_v31, 16  ;;  %v180_v52 = vrot.slane %v178_v40, 4  ;;  %v197_v61 = vshll.u32 %v1295_v36, 16 }
  0x3b   :  { %v146_v19 = vor.u32 %v145_v9, %v141_v5  ;;  %v142_v37 = vsel %vm1250_vm2, %v137_v27, %v141_v5  ;;  %v183_v53 = vrot.slane %v181_v41, 5  ;;  %v872_v63 = vcombine.low %v1287_v25, %v1291_v31  ;;  %v1098_v5 = vld [vmem:[#allocation5 + $0x98] sm:$0xff]  }
  0x3c   :  { %956 = vmatpush3.bf16.msra.mxu1 %v1086_v10  ;;  %v151_v10 = vrot.slane %v149_v1, 5  ;;  %v189_v58 = vrot.slane %v187_v44, 5  ;;  %v193_v60 = vrot.slane %v191_v45, 4  ;;  %v202_v0 = vshrl.u32 %v1305_v46, 16 }
  0x3d   :  { %984 = vmatpush3.bf16.msra.mxu0 %v1087_v11  ;;  %957 = vmatprep.subr.bf16.mxu1 %v1088_v20  ;;  %v1280_v11 = vld [vmem:[#allocation2 + $0x2c] sm:$0x1]  ;;  %v147_v32 = vrot.slane %v146_v19, 4  ;;  %v205_v4 = vshll.u32 %v1305_v46, 16  ;;  %v215_v17 = vshrl.u32 %v1307_v47, 16  ;;  %v221_v18 = vshll.u32 %v1309_v56, 16 }
  0x3e   :  { %985 = vmatprep.subr.bf16.mxu0 %v1089_v33  ;;  %v173_v24 = vshll.u32 %v1280_v11, 16  ;;  %v194_v2 = vor.u32 %v193_v60, %v189_v58  ;;  %v204_v9 = vrot.slane %v202_v0, 4  ;;  %v562_v19 = vld [vmem:[#allocation2 + $0x18] sm:$0xe]  ;;  %v873_v40 = vcombine.low %v1305_v46, %v1307_v47  ;;  %v563_v60 = vld [vmem:[#allocation2 + $0x24] sm:$0xe] }
  0x3f   :  { %v207_v16 = vrot.slane %v205_v4, 5  ;;  %v217_v27 = vrot.slane %v215_v17, 4  ;;  %v600_v41 = vrot.slane %v1263_v55, 5  ;;  %v611_v38 = vrot.slane %v1291_v31, 5 }
  0x40   :  { %958 = vmatpush3.bf16.msra.mxu1 %v1088_v20  ;;  %v156_v20 = vrot.slane %v154_v12, 4  ;;  %v175_v34 = vrot.slane %v173_v24, 5  ;;  %v560_v12 = vld [vmem:[#allocation2] sm:$0xe]  ;;  %v885_v0 = vrot.slane %v563_v60, 9  ;;  %v614_v31 = vrot.slane %v1295_v36, 5 }
  0x41   :  { %986 = vmatpush3.bf16.msra.mxu0 %v1089_v33  ;;  %959 = vmatprep.subr.bf16.mxu1 %v1090_v42  ;;  %v169_v33 = vrot.slane %v167_v21, 4 }
  0x42   :  { %987 = vmatprep.subr.bf16.mxu0 %v1091_v50  ;;  %v160_v39 = vor.u32 %v159_v29, %v156_v20  ;;  %v586_v20 = vrot.slane %v1231_v14, 5  ;;  %v1100_v29 = vld [vmem:[#allocation5 + $0xa0] sm:$0xff]  }
  0x43   :  { %v170_v43 = vor.u32 %v169_v33, %v165_v30  ;;  %v884_v33 = vrot.slane %v562_v19, 9 }
  0x44   :  { %960 = vmatpush3.bf16.msra.mxu1 %v1090_v42  ;;  %v152_v42 = vsel %vm1250_vm2, %v147_v32, %v151_v10  ;;  %v161_v51 = vrot.slane %v160_v39, 4  ;;  %v211_v10 = vshll.u32 %v1307_v47, 16  ;;  %v585_v32 = vrot.slane %v583_v49, 4 }
  0x45   :  { %988 = vmatpush3.bf16.msra.mxu0 %v1091_v50  ;;  %1029 = vmatprep.subr.bf16.mxu1 %v1093_v59  ;;  %v856_v50 = vcombine.low %v142_v37, %v152_v42  ;;  %v171_v57 = vrot.slane %v170_v43, 4  ;;  %v223_v37 = vrot.slane %v221_v18, 5  ;;  %v597_v39 = vrot.slane %v1261_v54, 5  ;;  %v1102_v54 = vld [vmem:[#allocation5 + $0xa8] sm:$0xff]  }
  0x46   :  { %1001 = vmatprep.subr.bf16.mxu0 %v1093_v59  ;;  %v166_v62 = vsel %vm1250_vm2, %v161_v51, %v165_v30  ;;  %v213_v24 = vrot.slane %v211_v10, 5  ;;  %v587_v45 = vsel %vm1330_vm5, %v585_v32, %v586_v20  ;;  %v621_v18 = vrot.slane %v1309_v56, 5 }
  0x47   :  { %962 = vmatmul.mubr.bf16.vlgmr.msra.gmra.mrb[0].mxu1 %v855_v15  ;;  %v176_v1 = vsel %vm1250_vm2, %v171_v57, %v175_v34  ;;  %v195_v15 = vrot.slane %v194_v2, 4  ;;  %v598_v46 = vsel %vm1330_vm5, %v884_v33, %v597_v39  ;;  %v599_v55 = vrot.slane %v597_v39, 4 }
  0x48   :  { %990 = vmatmul.mubr.bf16.vlgmr.msra.gmra.mrb[0].mxu0 %v869_v3  ;;  %1037 = vmatpush3.bf16.msra.mxu1 %v1093_v59  ;;  %v199_v3 = vrot.slane %v197_v61, 5  ;;  %v857_v6 = vcombine.low %v166_v62, %v176_v1  ;;  %v604_v57 = vrot.slane %v1276_v7, 5  ;;  %v564_v61 = vld [vmem:[#allocation2 + $0x30] sm:$0xe]  ;;  %v593_v62 = vrot.slane %v1240_v23, 5  ;;  %v1105_v1 = vld [vmem:[#allocation5 + $0xb8] sm:$0xff]  }
  0x49   :  { %1002 = vmatpush3.bf16.msra.mxu0 %v1093_v59  ;;  %1030 = vmatprep.subr.bf16.mxu1 %v1095_v26  ;;  %v184_v59 = vor.u32 %v183_v53, %v180_v52  ;;  %v601_v13 = vsel %vm1330_vm5, %v599_v55, %v600_v41  ;;  %v561_v52 = vld [vmem:[#allocation2 + $0xc] sm:$0xe]  ;;  %v590_v53 = vrot.slane %v1238_v22, 5  ;;  %v886_v2 = vrot.slane %v564_v61, 9 }
  0x4a   :  { %1003 = vmatprep.subr.bf16.mxu0 %v1095_v26  ;;  %993 = vmatprep.mubr.bf16.mxu0 %v870_v28  ;;  %v200_v25 = vsel %vm1250_vm2, %v195_v15, %v199_v3  ;;  %v882_v28 = vrot.slane %v560_v12, 9  ;;  %v606_v7 = vrot.slane %v604_v57, 4  ;;  %v613_v3 = vrot.slane %v611_v38, 4 }
  0x4b   :  { %965 = vmatprep.mubr.bf16.mxu1 %v856_v50  ;;  %v185_v8 = vrot.slane %v184_v59, 4  ;;  %v883_v59 = vrot.slane %v561_v52, 9  ;;  %v592_v22 = vrot.slane %v590_v53, 4  ;;  %v612_v36 = vsel %vm1330_vm5, %v886_v2, %v611_v38 }
  0x4c   :  { %1038 = vmatpush3.bf16.msra.mxu1 %v1095_v26  ;;  %v584_v44 = vsel %vm1330_vm5, %v882_v28, %v583_v49  ;;  %v890_v49 = vcombine.low %v598_v46, %v601_v13  ;;  %v902_v13 = vld [vmem:[%s1395_s2] ss:$0 sm:$0xff]  ;;  %s1182_s2 = smov [#allocation7]  }
  0x4d   :  { %1004 = vmatpush3.bf16.msra.mxu0 %v1095_v26  ;;  %1031 = vmatprep.subr.bf16.mxu1 %v1096_v48  ;;  %v190_v21 = vsel %vm1250_vm2, %v185_v8, %v189_v58  ;;  %v208_v26 = vor.u32 %v207_v16, %v204_v9  ;;  %v888_v51 = vcombine.low %v584_v44, %v587_v45  ;;  %v1104_v58 = vld [vmem:[#allocation5 + $0xb0] sm:$0xff]   ;;  %s841_s11 = sshll.u32 %s1182_s2, 4  ;;  %s842_s11 = int_to_ptr.vmem [resolvable:$true] %s841_s11 }
  0x4e   :  { %1005 = vmatprep.subr.bf16.mxu0 %v1096_v48  ;;  %v858_v30 = vcombine.low %v190_v21, %v200_v25  ;;  %v591_v23 = vsel %vm1330_vm5, %v883_v59, %v590_v53  ;;  %v594_v4 = vsel %vm1330_vm5, %v592_v22, %v593_v62  ;;  %v615_v8 = vsel %vm1330_vm5, %v613_v3, %v614_v31  ;;  %v565_v9 = vld [vmem:[#allocation2 + $0x3c] sm:$0xe]  ;;  %s1150_s12 = scalar_lea.vmem %s842_s11, 1536  ;;  %p1155_p3 = scmp.lt.s32.totalorder %s842_s11, %s842_s11 }
  0x4f   :  { %966 = vmatmul.mubr.bf16.gmra.mrb[4].mxu1 %v857_v6  ;;  %v209_v34 = vrot.slane %v208_v26, 4  ;;  %v618_v6 = vrot.slane %v1307_v47, 5  ;;  %v889_v10 = vcombine.low %v591_v23, %v594_v4  ;;  %v892_v15 = vcombine.low %v612_v36, %v615_v8  ;;  %p1151_p2 = scmp.ne.s32.totalorder %s842_s11, %s1150_s12  ;;  %p1156_p4 = scmp.lt.s32.totalorder %s1150_s12, %s1150_s12 }
  0x50   :  { %1039 = vmatpush3.bf16.msra.mxu1 %v1096_v48  ;;  %994 = vmatmul.mubr.bf16.gmra.mrb[4].mxu0 %v871_v35  ;;  %v218_v35 = vor.u32 %v217_v27, %v213_v24  ;;  %v887_v16 = vrot.slane %v565_v9, 9 }
  0x51   :  { %1006 = vmatpush3.bf16.msra.mxu0 %v1096_v48  ;;  %1032 = vmatprep.subr.bf16.mxu1 %v1098_v5  ;;  %v214_v42 = vsel %vm1250_vm2, %v209_v34, %v213_v24  ;;  %v620_v17 = vrot.slane %v618_v6, 4  ;;  %p1157_p5 = por %p1156_p4, %p1155_p3 }
  0x52   :  { %1007 = vmatprep.subr.bf16.mxu0 %v1098_v5  ;;  %997 = vmatprep.mubr.bf16.mxu0 %v872_v63  ;;  %v219_v43 = vrot.slane %v218_v35, 4  ;;  %v607_v63 = vrot.slane %v1280_v11, 5  ;;  %v605_v11 = vsel %vm1330_vm5, %v885_v0, %v604_v57  ;;  %v619_v47 = vsel %vm1330_vm5, %v887_v16, %v618_v6 }
  0x53   :  { %969 = vmatprep.mubr.bf16.mxu1 %v858_v30  ;;  %v622_v19 = vsel %vm1330_vm5, %v620_v17, %v621_v18  ;;  %p1158_p6 = pnand %p1157_p5, %p1151_p2 }
  0x54   :  { %1040 = vmatpush3.bf16.msra.mxu1 %v1098_v5  ;;  %v224_v48 = vsel %vm1250_vm2, %v219_v43, %v223_v37  ;;  %v893_v20 = vcombine.low %v619_v47, %v622_v19 }
  0x55   :  { %1008 = vmatpush3.bf16.msra.mxu0 %v1098_v5  ;;  %1033 = vmatprep.subr.bf16.mxu1 %v1100_v29  ;;  %v859_v50 = vcombine.low %v214_v42, %v224_v48  ;;  %v608_v5 = vsel %vm1330_vm5, %v606_v7, %v607_v63 }
  0x56   :  { %1009 = vmatprep.subr.bf16.mxu0 %v1100_v29  ;;  %v891_v12 = vcombine.low %v605_v11, %v608_v5 }
  0x57   :  { %970 = vmatmul.mubr.bf16.gmra.mrb[8].mxu1 %v859_v50 }
  0x58   :  { %1041 = vmatpush3.bf16.msra.mxu1 %v1100_v29  ;;  %998 = vmatmul.mubr.bf16.gmra.mrb[8].mxu0 %v873_v40 }
  0x59   :  { %1010 = vmatpush3.bf16.msra.mxu0 %v1100_v29  ;;  %1034 = vmatprep.subr.bf16.mxu1 %v1102_v54 }
  0x5a   :  { %1011 = vmatprep.subr.bf16.mxu0 %v1102_v54  ;;  %1017 = vmatprep.mubr.bf16.mxu0 %v888_v51 }
  0x5b   :  { %1021 = vmatprep.mubr.bf16.mxu1 %v890_v49 }
  0x5c   :  { %1042 = vmatpush3.bf16.msra.mxu1 %v1102_v54 }
  0x5d   :  { %1012 = vmatpush3.bf16.msra.mxu0 %v1102_v54  ;;  %1035 = vmatprep.subr.bf16.mxu1 %v1104_v58 }
  0x5e   :  { %1013 = vmatprep.subr.bf16.mxu0 %v1104_v58 }
  0x60   :  { %1043 = vmatpush3.bf16.msra.mxu1 %v1104_v58 }
  0x61   :  { %1014 = vmatpush3.bf16.msra.mxu0 %v1104_v58  ;;  %1036 = vmatprep.subr.bf16.mxu1 %v1105_v1 }
  0x62   :  { %1015 = vmatprep.subr.bf16.mxu0 %v1105_v1 }
  0x64   :  { %1044 = vmatpush3.bf16.msra.mxu1 %v1105_v1 }
  0x65   :  { %1016 = vmatpush3.bf16.msra.mxu0 %v1105_v1 }
  0x67   :  { %1022 = vmatmul.mubr.bf16.vlgmr.msra.gmra.mrb[12].mxu1 %v891_v12 }
  0x68   :  { %1018 = vmatmul.mubr.bf16.vlgmr.msra.gmra.mrb[0].mxu0 %v889_v10  ;;  %1025 = vmatprep.mubr.bf16.mxu1 %v892_v15 }
  0x6f   :  { %1026 = vmatmul.mubr.bf16.gmra.mrb[16].mxu1 %v893_v20 }
 0x11a   :  { %v963_v21 = vpop.f32.mrb[0].mxu1 }
 0x11b   :  { %v348_v24 = vpop.f32.mrb[1].mxu1 }
 0x11c   :  { %v964_v25 = vpop.f32.mrb[2].mxu1 }
 0x11d   :  { %v351_v26 = vpop.f32.mrb[3].mxu1 }
 0x122   :  { %v967_v27 = vpop.f32.mrb[4].mxu1 }
 0x123   :  { %v995_v28 = vpop.f32.mrb[4].mxu0  ;;  %v364_v29 = vpop.f32.mrb[5].mxu1 }
 0x124   :  { %v538_v56 = vadd.f32 %v995_v28, %v967_v27  ;;  %v529_v30 = vpop.f32.mrb[5].mxu0  ;;  %v968_v32 = vpop.f32.mrb[6].mxu1 }
 0x125   :  { %v530_v33 = vadd.f32 %v529_v30, %v364_v29  ;;  %v996_v34 = vpop.f32.mrb[6].mxu0  ;;  %v367_v35 = vpop.f32.mrb[7].mxu1 }
 0x126   :  { %v541_v37 = vadd.f32 %v996_v34, %v968_v32  ;;  %v532_v39 = vpop.f32.mrb[7].mxu0 }
 0x127   :  { %v533_v40 = vadd.f32 %v532_v39, %v367_v35 }
 0x12a   :  { %v971_v42 = vpop.f32.mrb[8].mxu1 }
 0x12b   :  { %v999_v14 = vpop.f32.mrb[8].mxu0  ;;  %v380_v45 = vpop.f32.mrb[9].mxu1 }
 0x12c   :  { %v545_v41 = vpop.f32.mrb[9].mxu0  ;;  %v554_v44 = vadd.f32 %v999_v14, %v971_v42  ;;  %v972_v55 = vpop.f32.mrb[10].mxu1 }
 0x12d   :  { %v1000_v43 = vpop.f32.mrb[10].mxu0  ;;  %v546_v46 = vadd.f32 %v545_v41, %v380_v45  ;;  %v383_v50 = vpop.f32.mrb[11].mxu1 }
 0x12e   :  { %v548_v54 = vpop.f32.mrb[11].mxu0  ;;  %v557_v48 = vadd.f32 %v1000_v43, %v972_v55 }
 0x12f   :  { %v549_v51 = vadd.f32 %v548_v54, %v383_v50 }
 0x13a   :  { %v1023_v49 = vpop.f32.mrb[12].mxu1 }
 0x13b   :  { %v1019_v52 = vpop.f32.mrb[0].mxu0  ;;  %v799_v53 = vadd.f32 %v1023_v49, %v538_v56  ;;  %v762_v57 = vpop.f32.mrb[13].mxu1 }
 0x13c   :  { %v1045_v58 = vadd.f32 %v1019_v52, %v963_v21  ;;  %v746_v60 = vpop.f32.mrb[1].mxu0  ;;  %v797_v38 = vadd.f32 %v762_v57, %v530_v33  ;;  %v1024_v61 = vpop.f32.mrb[14].mxu1 }
 0x13d   :  { %v818_v62 = vadd.f32 %v902_v13, %v799_v53  ;;  %v1046_v59 = vadd.f32 %v746_v60, %v348_v24  ;;  %v1020_v63 = vpop.f32.mrb[2].mxu0  ;;  %v800_v22 = vadd.f32 %v1024_v61, %v541_v37  ;;  %v765_v0 = vpop.f32.mrb[15].mxu1 }
 0x13e   :  { %v814_v7 = vadd.f32 %v1045_v58, %v902_v13  ;;  %v816_v1 = vadd.f32 %v902_v13, %v797_v38  ;;  %v1047_v2 = vadd.f32 %v1020_v63, %v964_v25  ;;  %v749_v3 = vpop.f32.mrb[3].mxu0  ;;  %v798_v31 = vadd.f32 %v765_v0, %v533_v40 }
 0x13f   :  { %830 = vst [vmem:[#allocation7 + $0x30] sm:$0xff] %v818_v62  ;;  %v812_v23 = vadd.f32 %v1046_v59, %v902_v13  ;;  %v819_v4 = vadd.f32 %v902_v13, %v800_v22  ;;  %v1048_v11 = vadd.f32 %v749_v3, %v351_v26 }
 0x140   :  { %826 = vst [vmem:[#allocation7 + $0x10] sm:$0xff] %v814_v7  ;;  %828 = vst [vmem:[#allocation7 + $0x20] sm:$0xff] %v816_v1  ;;  %v815_v5 = vadd.f32 %v1047_v2, %v902_v13  ;;  %v817_v6 = vadd.f32 %v902_v13, %v798_v31 }
 0x141   :  { %824 = vst [vmem:[#allocation7] sm:$0xff] %v812_v23  ;;  %831 = vst [vmem:[#allocation7 + $0x38] sm:$0xff] %v819_v4  ;;  %v813_v36 = vadd.f32 %v1048_v11, %v902_v13 }
 0x142   :  { %827 = vst [vmem:[#allocation7 + $0x18] sm:$0xff] %v815_v5  ;;  %829 = vst [vmem:[#allocation7 + $0x28] sm:$0xff] %v817_v6  ;;  %v1027_v8 = vpop.f32.mrb[16].mxu1 }
 0x143   :  { %825 = vst [vmem:[#allocation7 + $0x8] sm:$0xff] %v813_v36  ;;  %v803_v9 = vadd.f32 %v1027_v8, %v554_v44  ;;  %v778_v10 = vpop.f32.mrb[17].mxu1 }
 0x144   :  { %v801_v12 = vadd.f32 %v778_v10, %v546_v46  ;;  %v1028_v15 = vpop.f32.mrb[18].mxu1 }
 0x145   :  { %v822_v16 = vadd.f32 %v902_v13, %v803_v9  ;;  %v804_v17 = vadd.f32 %v1028_v15, %v557_v48  ;;  %v781_v18 = vpop.f32.mrb[19].mxu1 }
 0x146   :  { %v820_v47 = vadd.f32 %v902_v13, %v801_v12  ;;  %v802_v19 = vadd.f32 %v781_v18, %v549_v51 }
 0x147   :  { %834 = vst [vmem:[#allocation7 + $0x50] sm:$0xff] %v822_v16  ;;  %v823_v20 = vadd.f32 %v902_v13, %v804_v17 }
 0x148   :  { %832 = vst [vmem:[#allocation7 + $0x40] sm:$0xff] %v820_v47  ;;  %v821_v21 = vadd.f32 %v902_v13, %v802_v19 }
 0x149   :  { %835 = vst [vmem:[#allocation7 + $0x58] sm:$0xff] %v823_v20 }
 0x14a   :  { %833 = vst [vmem:[#allocation7 + $0x48] sm:$0xff] %v821_v21 }
 0x14b   :  { %1161 = shalt.err (!%p1158_p6)
}
 0x14c   :  { %s1162_s15 = scalar_lea.hbm %s1396_s3, 1536 }
 0x14d   :  { %p1163_p7 = scmp.ne.s32.totalorder %s1396_s3, %s1162_s15  ;;  %p1166_p8 = scmp.lt.u32.totalorder %s1162_s15, %s1396_s3 }
 0x14f   :  { %p1168_p9 = pnand %p1166_p8, %p1163_p7 }
 0x151   :  { %1171 = shalt.err (!%p1168_p9)
}
 0x152   :  { %s1183_s20 = smov 128   ;;  %s1184_s21 = smov 8  }
 0x153   :  { %847 = dma.vmem_to_hbm [thread:$0]  %s842_s11, 1536, %s1396_s3, [#allocation4], %s1183_s20, %s1183_s20, %s1184_s21  }
 0x154   :  { %1176 = dma.done.wait [#allocation4], 1536  }
 0x155   :  { %1177 = vsyncadd [#allocation4], 4294965760 }
 0x156   :  { %851 = vsyncpa [#allocation3], 1 }
 0x157   :  { %852 = vsyncpa [#allocation6], 1 }
 0x158   :  { %853 = vsyncpa [#allocation4], 1 }

</bundles_post_ra>
